<compile_context>
chip_gen: v7x
topology: tpu7x:2x2x1
jax: 0.10.0
libtpu: 0.0.40
codegen_flags: <defaults>
</compile_context>

<pallas_src>
import numpy as np
import jax
import jax.numpy as jnp
from jax.experimental import pallas as pl
from jax.experimental.pallas import tpu as pltpu

ALPHA_FOCAL = 0.25          # focal alpha (gamma == 2 -> implemented as a square)
MATCH_ALPHA = 0.8
MATCH_BETA = 0.2
IGNORE_LABEL = 16
NEG_LOGIT = -1.0e4          # sigmoid(-1e4) == 0 and bce(-1e4, 0) == 0 exactly in f32
VMEM_LIMIT = 48 * 1024 * 1024


def _round_up(x, m):
    return ((int(x) + m - 1) // m) * m


def _bce_with_logits(x, t):
    # numerically stable binary_cross_entropy_with_logits (PyTorch formulation)
    return jnp.maximum(x, 0.0) - x * t + jnp.log(1.0 + jnp.exp(-jnp.abs(x)))


# ---------------------------------------------------------------------------
# Kernel 1: fused matcher cost  (dice_score + class prob + cost)
# grid = (BN tiles [parallel], M tiles [reduction])
# ---------------------------------------------------------------------------

def _cost_kernel(pred_ref, tgt_t_ref, t2_ref, logits_ref, sel_ref, out_ref,
                 num_acc, p2_acc):
    k = pl.program_id(1)

    @pl.when(k == 0)
    def _():
        num_acc[...] = jnp.zeros_like(num_acc)
        p2_acc[...] = jnp.zeros_like(p2_acc)

    p = jax.nn.sigmoid(pred_ref[...])                               # f32 (tm, tk)
    # bf16 MXU operands, f32 accumulation
    num_acc[...] += jnp.dot(p.astype(jnp.bfloat16), tgt_t_ref[...],
                            preferred_element_type=jnp.float32)     # (tm, TP)
    p2_acc[...] += jnp.sum(p * p, axis=-1, keepdims=True)           # (tm, 1)

    @pl.when(k == pl.num_programs(1) - 1)
    def _():
        score = (2.0 * num_acc[...]) / (p2_acc[...] + t2_ref[...] + 1e-4)
        prob = jax.nn.sigmoid(logits_ref[...])                      # (tm, C)
        mprob = jnp.dot(prob, sel_ref[...],
                        preferred_element_type=jnp.float32)         # (tm, TP)
        # score**0.8 * prob**0.2  (clamped exp/log; real entries are > 0)
        cost = (jnp.exp(MATCH_ALPHA * jnp.log(jnp.maximum(score, 1e-20))) *
                jnp.exp(MATCH_BETA * jnp.log(jnp.maximum(mprob, 1e-20))))
        out_ref[...] = cost


def _run_cost(pred_pad, tgt_t_bf16, t2, logits_pad, class_sel, tm, tk):
    BNP, MP = pred_pad.shape
    TP = tgt_t_bf16.shape[1]
    C = logits_pad.shape[1]
    grid = (BNP // tm, MP // tk)
    return pl.pallas_call(
        _cost_kernel,
        out_shape=jax.ShapeDtypeStruct((BNP, TP), jnp.float32),
        grid_spec=pltpu.PrefetchScalarGridSpec(
            num_scalar_prefetch=0,
            grid=grid,
            in_specs=[
                pl.BlockSpec((tm, tk), lambda i, k: (i, k)),   # mask logits (f32)
                pl.BlockSpec((tk, TP), lambda i, k: (k, 0)),   # targets^T   (bf16)
                pl.BlockSpec((1, TP), lambda i, k: (0, 0)),    # sum(t*t)
                pl.BlockSpec((tm, C), lambda i, k: (i, 0)),    # class logits
                pl.BlockSpec((C, TP), lambda i, k: (0, 0)),    # one-hot class select
            ],
            out_specs=pl.BlockSpec((tm, TP), lambda i, k: (i, 0)),
            scratch_shapes=[pltpu.VMEM((tm, TP), jnp.float32),
                            pltpu.VMEM((tm, 1), jnp.float32)],
        ),
        compiler_params=pltpu.CompilerParams(
            dimension_semantics=("parallel", "arbitrary"),
            vmem_limit_bytes=VMEM_LIMIT),
    )(pred_pad, tgt_t_bf16, t2, logits_pad, class_sel)


# ---------------------------------------------------------------------------
# Kernel 2: sigmoid focal loss (alpha=0.25, gamma=2), scalar sum over all rows.
# Labels are built in-kernel from an int32 class-index column.
# grid = (BN tiles,)  -- reduction into a (1,1) scalar
# ---------------------------------------------------------------------------

def _focal_kernel(logits_ref, cls_ref, out_ref, acc):
    i = pl.program_id(0)

    @pl.when(i == 0)
    def _():
        acc[...] = jnp.zeros_like(acc)

    x = logits_ref[...]                          # (tm, C) f32
    cls = cls_ref[...]                           # (tm, 1) int32
    tm, C = x.shape
    iota = jax.lax.broadcasted_iota(jnp.int32, (tm, C), 1)
    t = jnp.where((iota == cls) & (cls != IGNORE_LABEL), 1.0, 0.0)

    ce = _bce_with_logits(x, t)
    p = jax.nn.sigmoid(x)
    p_t = p * t + (1.0 - p) * (1.0 - t)
    one_minus = 1.0 - p_t
    loss = ce * one_minus * one_minus            # gamma == 2
    alpha_t = ALPHA_FOCAL * t + (1.0 - ALPHA_FOCAL) * (1.0 - t)
    loss = alpha_t * loss

    acc[...] += jnp.sum(jnp.sum(loss, axis=-1, keepdims=True),
                        axis=0, keepdims=True)

    @pl.when(i == pl.num_programs(0) - 1)
    def _():
        out_ref[...] = acc[...]


def _run_focal(logits_pad, cls_pad, tm):
    BNP, C = logits_pad.shape
    return pl.pallas_call(
        _focal_kernel,
        out_shape=jax.ShapeDtypeStruct((1, 1), jnp.float32),
        grid_spec=pltpu.PrefetchScalarGridSpec(
            num_scalar_prefetch=0,
            grid=(BNP // tm,),
            in_specs=[pl.BlockSpec((tm, C), lambda i: (i, 0)),
                      pl.BlockSpec((tm, 1), lambda i: (i, 0))],
            out_specs=pl.BlockSpec((1, 1), lambda i: (0, 0)),
            scratch_shapes=[pltpu.VMEM((1, 1), jnp.float32)],
        ),
        compiler_params=pltpu.CompilerParams(
            dimension_semantics=("arbitrary",),
            vmem_limit_bytes=VMEM_LIMIT),
    )(logits_pad, cls_pad)


# ---------------------------------------------------------------------------
# Kernel 3: per-matched-instance stats -> scalar sums
# (mask IoU -> objectness BCE, dice loss, mask BCE), tiled over M (reduction).
# ---------------------------------------------------------------------------

def _mask_stats_kernel(src_ref, tgt_ref, score_ref, rmask_ref,
                       dice_out, bce_mask_out, bce_obj_out,
                       a_inter, a_binp, a_tb, a_pt, a_pp, a_tt, a_bce):
    k = pl.program_id(0)

    @pl.when(k == 0)
    def _():
        for a in (a_inter, a_binp, a_tb, a_pt, a_pp, a_tt, a_bce):
            a[...] = jnp.zeros_like(a)

    x = src_ref[...]                              # (KP, tk) mask logits
    t = tgt_ref[...]                              # (KP, tk) binary targets
    p = jax.nn.sigmoid(x)
    binp = (p >= 0.4).astype(jnp.float32)
    tb = (t > 0.5).astype(jnp.float32)

    a_inter[...] += jnp.sum(binp * tb, axis=-1, keepdims=True)
    a_binp[...] += jnp.sum(binp, axis=-1, keepdims=True)
    a_tb[...] += jnp.sum(tb, axis=-1, keepdims=True)
    a_pt[...] += jnp.sum(p * t, axis=-1, keepdims=True)
    a_pp[...] += jnp.sum(p * p, axis=-1, keepdims=True)
    a_tt[...] += jnp.sum(t * t, axis=-1, keepdims=True)
    a_bce[...] += jnp.sum(_bce_with_logits(x, t), axis=-1, keepdims=True)

    @pl.when(k == pl.num_programs(0) - 1)
    def _():
        m = rmask_ref[...]                         # (KP, 1) valid-row mask
        inter = a_inter[...]
        union = a_tb[...] + a_binp[...] - inter
        iou = inter / (union + 1e-6)
        dice = 1.0 - (2.0 * a_pt[...]) / (a_pp[...] + a_tt[...] + 1e-4)
        bce_obj = _bce_with_logits(score_ref[...], iou)
        dice_out[...] = jnp.sum(dice * m, axis=0, keepdims=True)
        bce_mask_out[...] = jnp.sum(a_bce[...] * m, axis=0, keepdims=True)
        bce_obj_out[...] = jnp.sum(bce_obj * m, axis=0, keepdims=True)


def _run_mask_stats(src_sel, tgt_sel, scores, rmask, tk):
    KP, MP = src_sel.shape
    scalar = jax.ShapeDtypeStruct((1, 1), jnp.float32)
    kp_spec = pl.BlockSpec((KP, 1), lambda k: (0, 0))
    scalar_spec = pl.BlockSpec((1, 1), lambda k: (0, 0))
    return pl.pallas_call(
        _mask_stats_kernel,
        out_shape=(scalar, scalar, scalar),
        grid_spec=pltpu.PrefetchScalarGridSpec(
            num_scalar_prefetch=0,
            grid=(MP // tk,),
            in_specs=[pl.BlockSpec((KP, tk), lambda k: (0, k)),
                      pl.BlockSpec((KP, tk), lambda k: (0, k)),
                      kp_spec, kp_spec],
            out_specs=(scalar_spec, scalar_spec, scalar_spec),
            scratch_shapes=[pltpu.VMEM((KP, 1), jnp.float32)] * 7,
        ),
        compiler_params=pltpu.CompilerParams(
            dimension_semantics=("arbitrary",),
            vmem_limit_bytes=VMEM_LIMIT),
    )(src_sel, tgt_sel, scores, rmask)


# ---------------------------------------------------------------------------
# Host-side Hungarian matching (the PyTorch matcher runs under no_grad, on CPU)
# ---------------------------------------------------------------------------

def _hungarian_min(cost):
    """Shortest-augmenting-path Hungarian. cost: (n, m) with n <= m.
    Returns col_for_row (length n) minimizing total cost."""
    cost = np.asarray(cost, dtype=np.float64)
    n, m = cost.shape
    INF = float("inf")
    u = np.zeros(n + 1)
    v = np.zeros(m + 1)
    p = np.zeros(m + 1, dtype=np.int64)      # p[j] = row (1-based) matched to col j
    for i in range(1, n + 1):
        p[0] = i
        j0 = 0
        minv = np.full(m + 1, INF)
        used = np.zeros(m + 1, dtype=bool)
        way = np.zeros(m + 1, dtype=np.int64)
        while True:
            used[j0] = True
            i0 = p[j0]
            delta = INF
            j1 = 0
            for j in range(1, m + 1):
                if not used[j]:
                    cur = cost[i0 - 1, j - 1] - u[i0] - v[j]
                    if cur < minv[j]:
                        minv[j] = cur
                        way[j] = j0
                    if minv[j] < delta:
                        delta = minv[j]
                        j1 = j
            for j in range(m + 1):
                if used[j]:
                    u[p[j]] += delta
                    v[j] -= delta
                else:
                    minv[j] -= delta
            j0 = j1
            if p[j0] == 0:
                break
        while True:
            j1 = way[j0]
            p[j0] = p[j1]
            j0 = j1
            if j0 == 0:
                break
    col_for_row = np.zeros(n, dtype=np.int64)
    for j in range(1, m + 1):
        if p[j] != 0:
            col_for_row[p[j] - 1] = j - 1
    return col_for_row


def _lsa_maximize(cost):
    """linear_sum_assignment(cost, maximize=True) equivalent; returns (rows, cols)
    sorted by row index, len == min(n_rows, n_cols)."""
    cost = np.asarray(cost, dtype=np.float64)
    n_rows, n_cols = cost.shape
    if n_cols <= n_rows:
        rows = _hungarian_min(-cost.T)                 # row assigned to each column
        cols = np.arange(n_cols, dtype=np.int64)
    else:
        cols = _hungarian_min(-cost)
        rows = np.arange(n_rows, dtype=np.int64)
    order = np.argsort(rows)
    return rows[order], cols[order]


# ---------------------------------------------------------------------------
# Full forward pass (Cal_Loss.forward)
# ---------------------------------------------------------------------------

def cal_loss(pred_logits, pred_masks, pred_scores, targets,
             row_tile=128, lane_tile=2048):
    B, N, C = pred_logits.shape
    M = pred_masks.shape[-1]
    BN = B * N
    targets_np = np.asarray(targets)

    # ---- target-instance extraction (mirrors InstMatcher's unique() loops) ----
    tgt_ids, tgt_masks_list, sizes, labels_per_img = [], [], [], []
    for b in range(B):
        flat = targets_np[b].reshape(-1)
        labels_b = [int(l) for l in sorted(np.unique(flat).tolist())
                    if l != IGNORE_LABEL]
        labels_per_img.append(np.asarray(labels_b, dtype=np.int64))
        for lbl in labels_b:
            tgt_ids.append(lbl)
            tgt_masks_list.append((flat == lbl).astype(np.float32))
        sizes.append(len(labels_b))
    tgt_ids = np.asarray(tgt_ids, dtype=np.int64)
    tgt_masks = np.stack(tgt_masks_list, axis=0)                 # (T, M)
    T = tgt_masks.shape[0]
    num_instances = float(T)

    # ---- padded / tiled shapes ----
    MP = _round_up(M, 128)
    tk = min(_round_up(lane_tile, 128), MP)
    MP = _round_up(MP, tk)
    tm = min(_round_up(row_tile, 8), _round_up(BN, 8))
    BNP = _round_up(max(BN, tm), tm)
    TP = _round_up(max(T, 1), 128)                               # lane-dense targets

    # ---- device-side padded prediction tensors (padding value gives exact zeros) --
    logits_flat = jnp.asarray(pred_logits, jnp.float32).reshape(BN, C)
    logits_pad = jnp.pad(logits_flat, ((0, BNP - BN), (0, 0)),
                         constant_values=NEG_LOGIT)
    masks_flat = jnp.asarray(pred_masks, jnp.float32).reshape(BN, M)
    masks_pad = jnp.pad(masks_flat, ((0, BNP - BN), (0, MP - M)),
                        constant_values=NEG_LOGIT)
    scores_flat = jnp.asarray(pred_scores, jnp.float32).reshape(BN)

    # ---- small host-built target tensors ----
    tgt_t = np.zeros((MP, TP), np.float32)
    tgt_t[:M, :T] = tgt_masks.T
    tgt_t_bf16 = jnp.asarray(tgt_t, jnp.bfloat16)                # bf16 MXU operand
    t2 = np.zeros((1, TP), np.float32)
    t2[0, :T] = (tgt_masks * tgt_masks).sum(-1)
    class_sel = np.zeros((C, TP), np.float32)
    class_sel[tgt_ids, np.arange(T)] = 1.0

    # ---- matcher cost (single fused kernel, single D2H sync) ----
    cost_dev = _run_cost(masks_pad, tgt_t_bf16, jnp.asarray(t2),
                         logits_pad, jnp.asarray(class_sel), tm, tk)
    cost = np.asarray(cost_dev)[:BN, :T].reshape(B, N, T)

    # TODO(synk): Hungarian matching (scipy.linear_sum_assignment) has no Pallas
    # equivalent; it runs on host (it is under no_grad in the PyTorch module).
    indices, col_off = [], 0
    for b in range(B):
        c_b = cost[b][:, col_off:col_off + sizes[b]]
        indices.append(_lsa_maximize(c_b))
        col_off += sizes[b]

    batch_idx = np.concatenate([np.full_like(src, b)
                                for b, (src, _) in enumerate(indices)])
    src_idx = np.concatenate([src for src, _ in indices])
    tgt_idx = np.concatenate([tgt for _, tgt in indices])
    K = int(src_idx.shape[0])

    # ---- classification (focal) loss ----
    target_classes = np.full((BNP,), IGNORE_LABEL, dtype=np.int32)
    target_classes_o = np.concatenate(
        [labels_per_img[b][J] for b, (_, J) in enumerate(indices)])
    target_classes[batch_idx * N + src_idx] = target_classes_o.astype(np.int32)
    cls_dev = jnp.asarray(target_classes.reshape(BNP, 1))

    focal_sum = _run_focal(logits_pad, cls_dev, tm)              # (1, 1)
    loss_labels = focal_sum[0, 0] / num_instances

    # ---- mask / dice / objectness losses on matched instances ----
    mix_tgt_idx = np.zeros_like(tgt_idx)
    cum = 0
    for b in range(B):
        mix_tgt_idx[cum:cum + sizes[b]] = cum
        cum += sizes[b]
    mix_tgt_idx = mix_tgt_idx + tgt_idx

    KP = _round_up(max(K, 8), 8)
    flat_idx = np.zeros((KP,), np.int32)
    flat_idx[:K] = (batch_idx * N + src_idx).astype(np.int32)

    # gather matched predictions on device (differentiable, no host round trip)
    src_sel = jnp.take(masks_pad, jnp.asarray(flat_idx), axis=0)           # (KP, MP)
    score_sel = jnp.take(scores_flat, jnp.asarray(flat_idx)).reshape(KP, 1)

    tgt_sel = np.zeros((KP, MP), np.float32)
    tgt_sel[:K, :M] = tgt_masks[mix_tgt_idx]
    rmask = np.zeros((KP, 1), np.float32)
    rmask[:K, 0] = 1.0

    dice_sum, bce_mask_sum, bce_obj_sum = _run_mask_stats(
        src_sel, jnp.asarray(tgt_sel), score_sel, jnp.asarray(rmask), tk)

    loss_objectness = bce_obj_sum[0, 0] / float(K)
    loss_dice = dice_sum[0, 0] / num_instances
    loss_mask = bce_mask_sum[0, 0] / float(K * M)
    loss_masks = 2.0 * loss_dice + 5.0 * loss_mask

    return 2.0 * loss_labels + 1.0 * loss_masks + 1.0 * loss_objectness


if __name__ == "__main__":
    key = jax.random.PRNGKey(0)
    B, N, C, H, W = 2, 8, 16, 16, 16
    M = H * W
    k1, k2, k3 = jax.random.split(key, 3)
    pred_logits = jax.random.normal(k1, (B, N, C), jnp.float32)
    pred_masks = jax.random.normal(k2, (B, N, M), jnp.float32)
    pred_scores = jax.random.normal(k3, (B, N), jnp.float32)

    # deterministic synthetic label maps (label 16 = ignore / background)
    targets = np.full((B, H, W), IGNORE_LABEL, np.int32)
    targets[0, 0:5, :] = 0        # batch 0: instances 0, 3, 7
    targets[0, 5:10, :] = 3
    targets[0, 10:13, :] = 7
    targets[1, :, 0:6] = 2        # batch 1: instances 2, 5
    targets[1, :, 6:12] = 5
    targets = jnp.asarray(targets)

    # small tiles so the toy shapes exercise the real multi-step tiling/accumulators
    loss = cal_loss(pred_logits, pred_masks, pred_scores, targets,
                    row_tile=8, lane_tile=128)
    loss = jax.block_until_ready(loss)
    assert np.isfinite(float(loss))
    print("KERNEL_OK")
</pallas_src>

<mosaic_0001>
module attributes {stable_mosaic.version = 11 : i64} {
  func.func @_cost_kernel(%arg0: i32, %arg1: i32, %arg2: memref<8x128xf32, #tpu.memory_space<vmem>>, %arg3: memref<128x128xbf16, #tpu.memory_space<vmem>>, %arg4: memref<1x128xf32, #tpu.memory_space<vmem>>, %arg5: memref<8x16xf32, #tpu.memory_space<vmem>>, %arg6: memref<16x128xf32, #tpu.memory_space<vmem>>, %arg7: memref<8x128xf32, #tpu.memory_space<vmem>>, %arg8: memref<8x128xf32, #tpu.memory_space<vmem>>, %arg9: memref<8x1xf32, #tpu.memory_space<vmem>>) attributes {dimension_semantics = [#tpu.dimension_semantics<parallel>, #tpu.dimension_semantics<arbitrary>], iteration_bounds = array<i64: 2, 2>, scalar_prefetch = 0 : i64, scratch_operands = 2 : i64, tpu.core_type = #tpu.core_type<tc>, window_params = [{transform_indices = @transform_0, window_bounds = array<i64: 8, 128>}, {transform_indices = @transform_1, window_bounds = array<i64: 128, 128>}, {pipeline_mode = #tpu.pipeline_mode<synchronous>, transform_indices = @transform_2, window_bounds = array<i64: 1, 128>}, {transform_indices = @transform_3, window_bounds = array<i64: 8, 16>}, {pipeline_mode = #tpu.pipeline_mode<synchronous>, transform_indices = @transform_4, window_bounds = array<i64: 16, 128>}, {transform_indices = @transform_5, window_bounds = array<i64: 8, 128>}]} {
    %c0_i32 = arith.constant 0 : i32
    %0 = arith.cmpi eq, %arg1, %c0_i32 : i32
    %1 = arith.extui %0 : i1 to i32
    %c0_i32_0 = arith.constant 0 : i32
    %2 = arith.cmpi ne, %1, %c0_i32_0 : i32
    scf.if %2 {
      %cst_15 = arith.constant 0.000000e+00 : f32
      %24 = vector.broadcast %cst_15 : f32 to vector<8x128xf32>
      %c0_16 = arith.constant 0 : index
      %c0_17 = arith.constant 0 : index
      %25 = vector.load %arg8[%c0_16, %c0_17] : memref<8x128xf32, #tpu.memory_space<vmem>>, vector<8x128xf32>
      tpu.vector_store %arg8[%c0_16, %c0_17], %24 {strides = array<i32>} : memref<8x128xf32, #tpu.memory_space<vmem>>, vector<8x128xf32>,
      %cst_18 = arith.constant 0.000000e+00 : f32
      %26 = vector.broadcast %cst_18 : f32 to vector<8x1xf32>
      %c0_19 = arith.constant 0 : index
      %c0_20 = arith.constant 0 : index
      %27 = vector.load %arg9[%c0_19, %c0_20] : memref<8x1xf32, #tpu.memory_space<vmem>>, vector<8x1xf32>
      tpu.vector_store %arg9[%c0_19, %c0_20], %26 {strides = array<i32>} : memref<8x1xf32, #tpu.memory_space<vmem>>, vector<8x1xf32>,
    } else {
    }
    %c0 = arith.constant 0 : index
    %c0_1 = arith.constant 0 : index
    %3 = vector.load %arg2[%c0, %c0_1] : memref<8x128xf32, #tpu.memory_space<vmem>>, vector<8x128xf32>
    %4 = arith.negf %3 : vector<8x128xf32>
    %5 = math.exp %4 : vector<8x128xf32>
    %cst = arith.constant 1.000000e+00 : f32
    %6 = vector.broadcast %cst : f32 to vector<8x128xf32>
    %7 = arith.addf %6, %5 : vector<8x128xf32>
    %8 = arith.divf %6, %7 : vector<8x128xf32>
    %c0_2 = arith.constant 0 : index
    %c0_3 = arith.constant 0 : index
    %9 = vector.load %arg8[%c0_2, %c0_3] : memref<8x128xf32, #tpu.memory_space<vmem>>, vector<8x128xf32>
    %10 = arith.truncf %8 : vector<8x128xf32> to vector<8x128xbf16>
    %c0_4 = arith.constant 0 : index
    %c0_5 = arith.constant 0 : index
    %11 = vector.load %arg3[%c0_4, %c0_5] : memref<128x128xbf16, #tpu.memory_space<vmem>>, vector<128x128xbf16>
    %cst_6 = arith.constant dense<0.000000e+00> : vector<8x128xf32>
    %12 = tpu.matmul %10, %11, %cst_6 {dimension_numbers = #tpu.dot_dimension_numbers<[1], [0], [0], [1], [0, 0, 1, 1], [], []>} : vector<8x128xbf16>, vector<128x128xbf16>, vector<8x128xf32> -> vector<8x128xf32>
    %13 = arith.addf %9, %12 : vector<8x128xf32>
    %c0_7 = arith.constant 0 : index
    %c0_8 = arith.constant 0 : index
    %14 = vector.load %arg8[%c0_7, %c0_8] : memref<8x128xf32, #tpu.memory_space<vmem>>, vector<8x128xf32>
    tpu.vector_store %arg8[%c0_7, %c0_8], %13 {strides = array<i32>} : memref<8x128xf32, #tpu.memory_space<vmem>>, vector<8x128xf32>,
    %c0_9 = arith.constant 0 : index
    %c0_10 = arith.constant 0 : index
    %15 = vector.load %arg9[%c0_9, %c0_10] : memref<8x1xf32, #tpu.memory_space<vmem>>, vector<8x1xf32>
    %16 = arith.mulf %8, %8 : vector<8x128xf32>
    %cst_11 = arith.constant dense<0.000000e+00> : vector<8xf32>
    %17 = vector.multi_reduction <add>, %16, %cst_11 [1] : vector<8x128xf32> to vector<8xf32>
    %18 = vector.shape_cast %17 : vector<8xf32> to vector<8x1xf32>
    %19 = arith.addf %15, %18 : vector<8x1xf32>
    %c0_12 = arith.constant 0 : index
    %c0_13 = arith.constant 0 : index
    %20 = vector.load %arg9[%c0_12, %c0_13] : memref<8x1xf32, #tpu.memory_space<vmem>>, vector<8x1xf32>
    tpu.vector_store %arg9[%c0_12, %c0_13], %19 {strides = array<i32>} : memref<8x1xf32, #tpu.memory_space<vmem>>, vector<8x1xf32>,
    %c1_i32 = arith.constant 1 : i32
    %21 = arith.cmpi eq, %arg1, %c1_i32 : i32
    %22 = arith.extui %21 : i1 to i32
    %c0_i32_14 = arith.constant 0 : i32
    %23 = arith.cmpi ne, %22, %c0_i32_14 : i32
    scf.if %23 {
      %c0_15 = arith.constant 0 : index
      %c0_16 = arith.constant 0 : index
      %24 = vector.load %arg8[%c0_15, %c0_16] : memref<8x128xf32, #tpu.memory_space<vmem>>, vector<8x128xf32>
      %cst_17 = arith.constant 2.000000e+00 : f32
      %25 = vector.broadcast %cst_17 : f32 to vector<8x128xf32>
      %26 = arith.mulf %25, %24 : vector<8x128xf32>
      %c0_18 = arith.constant 0 : index
      %c0_19 = arith.constant 0 : index
      %27 = vector.load %arg9[%c0_18, %c0_19] : memref<8x1xf32, #tpu.memory_space<vmem>>, vector<8x1xf32>
      %c0_20 = arith.constant 0 : index
      %c0_21 = arith.constant 0 : index
      %28 = vector.load %arg4[%c0_20, %c0_21] : memref<1x128xf32, #tpu.memory_space<vmem>>, vector<1x128xf32>
      %29 = vector.broadcast %27 : vector<8x1xf32> to vector<8x128xf32>
      %30 = vector.broadcast %28 : vector<1x128xf32> to vector<8x128xf32>
      %31 = arith.addf %29, %30 : vector<8x128xf32>
      %cst_22 = arith.constant 9.99999974E-5 : f32
      %32 = vector.broadcast %cst_22 : f32 to vector<8x128xf32>
      %33 = arith.addf %31, %32 : vector<8x128xf32>
      %34 = arith.divf %26, %33 : vector<8x128xf32>
      %c0_23 = arith.constant 0 : index
      %c0_24 = arith.constant 0 : index
      %35 = vector.load %arg5[%c0_23, %c0_24] : memref<8x16xf32, #tpu.memory_space<vmem>>, vector<8x16xf32>
      %36 = arith.negf %35 : vector<8x16xf32>
      %37 = math.exp %36 : vector<8x16xf32>
      %cst_25 = arith.constant 1.000000e+00 : f32
      %38 = vector.broadcast %cst_25 : f32 to vector<8x16xf32>
      %39 = arith.addf %38, %37 : vector<8x16xf32>
      %40 = arith.divf %38, %39 : vector<8x16xf32>
      %c0_26 = arith.constant 0 : index
      %c0_27 = arith.constant 0 : index
      %41 = vector.load %arg6[%c0_26, %c0_27] : memref<16x128xf32, #tpu.memory_space<vmem>>, vector<16x128xf32>
      %cst_28 = arith.constant dense<0.000000e+00> : vector<8x128xf32>
      %42 = tpu.matmul %40, %41, %cst_28 {dimension_numbers = #tpu.dot_dimension_numbers<[1], [0], [0], [1], [0, 0, 1, 1], [], []>} : vector<8x16xf32>, vector<16x128xf32>, vector<8x128xf32> -> vector<8x128xf32>
      %cst_29 = arith.constant 9.99999968E-21 : f32
      %43 = vector.broadcast %cst_29 : f32 to vector<8x128xf32>
      %44 = arith.maximumf %34, %43 : vector<8x128xf32>
      %45 = math.log %44 : vector<8x128xf32>
      %cst_30 = arith.constant 8.000000e-01 : f32
      %46 = vector.broadcast %cst_30 : f32 to vector<8x128xf32>
      %47 = arith.mulf %46, %45 : vector<8x128xf32>
      %48 = math.exp %47 : vector<8x128xf32>
      %cst_31 = arith.constant 9.99999968E-21 : f32
      %49 = vector.broadcast %cst_31 : f32 to vector<8x128xf32>
      %50 = arith.maximumf %42, %49 : vector<8x128xf32>
      %51 = math.log %50 : vector<8x128xf32>
      %cst_32 = arith.constant 2.000000e-01 : f32
      %52 = vector.broadcast %cst_32 : f32 to vector<8x128xf32>
      %53 = arith.mulf %52, %51 : vector<8x128xf32>
      %54 = math.exp %53 : vector<8x128xf32>
      %55 = arith.mulf %48, %54 : vector<8x128xf32>
      %c0_33 = arith.constant 0 : index
      %c0_34 = arith.constant 0 : index
      %56 = vector.load %arg7[%c0_33, %c0_34] : memref<8x128xf32, #tpu.memory_space<vmem>>, vector<8x128xf32>
      tpu.vector_store %arg7[%c0_33, %c0_34], %55 {strides = array<i32>} : memref<8x128xf32, #tpu.memory_space<vmem>>, vector<8x128xf32>,
    } else {
    }
    return
  }
  func.func @transform_0(%arg0: i32, %arg1: i32) -> (i32, i32) {
    %c0_i32 = arith.constant 0 : i32
    return %arg0, %arg1 : i32, i32
  }
  func.func @transform_1(%arg0: i32, %arg1: i32) -> (i32, i32) {
    %c0_i32 = arith.constant 0 : i32
    %c0_i32_0 = arith.constant 0 : i32
    return %arg1, %c0_i32 : i32, i32
  }
  func.func @transform_2(%arg0: i32, %arg1: i32) -> (i32, i32) {
    %c0_i32 = arith.constant 0 : i32
    %c0_i32_0 = arith.constant 0 : i32
    %c0_i32_1 = arith.constant 0 : i32
    return %c0_i32, %c0_i32_0 : i32, i32
  }
  func.func @transform_3(%arg0: i32, %arg1: i32) -> (i32, i32) {
    %c0_i32 = arith.constant 0 : i32
    %c0_i32_0 = arith.constant 0 : i32
    return %arg0, %c0_i32 : i32, i32
  }
  func.func @transform_4(%arg0: i32, %arg1: i32) -> (i32, i32) {
    %c0_i32 = arith.constant 0 : i32
    %c0_i32_0 = arith.constant 0 : i32
    %c0_i32_1 = arith.constant 0 : i32
    return %c0_i32, %c0_i32_0 : i32, i32
  }
  func.func @transform_5(%arg0: i32, %arg1: i32) -> (i32, i32) {
    %c0_i32 = arith.constant 0 : i32
    %c0_i32_0 = arith.constant 0 : i32
    return %arg0, %c0_i32 : i32, i32
  }
}

</mosaic_0001>

<bundles_post_ra>
// kernel: tpu_custom_call.1
= control target key start
LH: loop header
LB: loop body
LE: loop exit
PB: predicated region body
PF: predicated region fallthrough
CT: control target
= control target key end

     0   :  { %s1788_s0 = inlined_call_operand.hbm [shape: f32[16,256], index: 0, kind: input, shape index: {}]   ;;  %s1789_s1 = inlined_call_operand.hbm [shape: bf16[256,128], index: 1, kind: input, shape index: {}]   ;;  %s1790_s2 = inlined_call_operand.vmem [shape: f32[1,128], index: 2, kind: input, shape index: {}]   ;;  %s1791_s3 = inlined_call_operand.hbm [shape: f32[16,16], index: 3, kind: input, shape index: {}]   ;;  %s1792_s4 = inlined_call_operand.hbm [shape: f32[16,128], index: 4, kind: input, shape index: {}]   ;;  %s1793_s5 = inlined_call_operand.hbm [shape: f32[16,128], index: 5, kind: output, shape index: {}]  }
   0x1   :  { %1809 = sst [smem:[#allocation25_spill]] %s1789_s1 }
   0x2   :  { %1810 = sst [smem:[#allocation26_spill]] %s1790_s2 }
   0x3   :  { %1811 = sst [smem:[#allocation27_spill]] %s1792_s4 }
   0x4   :  { %1812 = sst [smem:[#allocation28_spill]] %s1793_s5 }
   0x5   :  { %10 = vsyncpa [#allocation5], 0 }
   0x6   :  { %12 = vsyncpa [#allocation5 + $0x1], 0 }
   0x7   :  { %13 = vsyncpa [#allocation8], 0 }
   0x8   :  { %15 = vsyncpa [#allocation8 + $0x1], 0 }
   0x9   :  { %16 = vsyncpa [#allocation11], 0 }
   0xa   :  { %17 = vsyncpa [#allocation6], 0 }
   0xb   :  { %19 = vsyncpa [#allocation6 + $0x1], 0  ;;  %s1335_s18 = smov 0   ;;  %s1337_s19 = smov 0  }
   0xc   :  { %s1339_s20 = smov 0   ;;  %s1341_s21 = smov 0  }
   0xd   :  { %s1343_s22 = smov 0   ;;  %s1345_s23 = smov 0  }
   0xe   :  { %s1347_s24 = smov 0   ;;  %s1349_s25 = smov 0  }
   0xf   :  { %s1351_s26 = smov 0   ;;  %s1353_s27 = smov 0  }
  0x10   :  { %s1355_s28 = smov 0   ;;  %s1357_s29 = smov 0  }
  0x11   :  { %s1359_s30 = smov 0   ;;  %s1361_s6 = smov 0  }
  0x12 LB: > { %1813 = sst [smem:[#allocation18_spill]] %s1255_s23  ;;  %s34_s7 = sadd.s32 1, %s1279_s29  ;;  %s1287_s6 = sphi %s1361_s6, %s25_s6   ;;  %s1283_s30 = sphi %s1359_s30, %s1874_s30   ;;  %s1279_s29 = sphi %s1357_s29, %s1873_s29   ;;  %s1275_s28 = sphi %s1355_s28, %s1872_s28   ;;  %s1271_s27 = sphi %s1353_s27, %s1871_s27   ;;  %s1267_s26 = sphi %s1351_s26, %s1870_s26   ;;  %s1263_s25 = sphi %s1349_s25, %s1869_s25   ;;  %s1259_s24 = sphi %s1347_s24, %s1868_s24   ;;  %s1255_s23 = sphi %s1345_s23, %s1859_s23   ;;  %s1251_s22 = sphi %s1343_s22, %s1867_s22   ;;  %s1247_s21 = sphi %s1341_s21, %s1866_s21   ;;  %s1243_s20 = sphi %s1339_s20, %s1865_s20   ;;  %s1239_s19 = sphi %s1337_s19, %s1864_s19   ;;  %s1235_s18 = sphi %s1335_s18, %s1863_s18  }
  0x13   : > { %1814 = sst [smem:[#allocation19_spill]] %s1271_s27  ;;  %p1797_p0 = scmp.eq.s32.totalorder %s1287_s6, 0 }
  0x14   : > { %1815 = sst [smem:[#allocation20_spill]] %s1275_s28  ;;  %p1407_p1 = scmp.ge.s32.totalorder %s34_s7, 2 }
  0x15   : > { %s72_s9 = sadd.s32 1, %s1255_s23  ;;  %p79_p2 = scmp.ne.s32.totalorder %s1255_s23, %s1251_s22 }
  0x16   : > { %s1816_s8 = scalar_select %p1407_p1, 1, 0 }
  0x17   : > { %s1876_s7 = smov (%p1407_p1, %s34_s7), 0  ;;  %p81_p4 = por %p79_p2, %p1797_p0 }
  0x18   : > { %1817 = sst [smem:[#allocation21_spill]] %s1876_s7  ;;  %s1424_s10 = ssub.s32 %s1279_s29, %s1876_s7 }
  0x19   : > { %p1796_p5 = scmp.lt.s32.totalorder %s1287_s6, 4  ;;  %p70_p6 = scmp.eq.s32.totalorder %s1424_s10, 0 }
  0x1a   : > { %s239_s11 = sand.u32 1, %s1287_s6   ;;  %s241_s12 = sand.u32 1, %s1255_s23  }
  0x1b   : > { %s1431_s13 = scalar_select %p70_p6, %s1255_s23, %s72_s9  }
  0x1c   : > { %s754_s14 = sshll.u32 %s241_s12, 6  ;;  %s783_s15 = sshll.u32 %s1279_s29, 10 }
  0x1d   : > { %1818 = sst [smem:[#allocation22_spill]] %s1431_s13  ;;  %s1819_s1 = sld [smem:[#allocation25_spill]] }
  0x1e   : > { %s243_s7 = scalar_lea.vmem [#allocation7], %s754_s14  ;;  %p1441_p7 = pnand %p1796_p5, %p81_p4 }
  0x1f   : > { %s250_s28 = sshll.u32 %s243_s7, 4  ;;  %s1447_s9 = scalar_lea.sflag [#allocation8], %s239_s11  ;;  %s1445_s28 = int_to_ptr.vmem [resolvable:$true] %s250_s28 }
  0x20   : > { %p1013_p9 = pneg %p1441_p7 }
  0x23   : > { %s1437_s5 = scalar_lea.hbm %s1819_s1, %s783_s15  ;;  %s1016_s15 = scalar_lea.hbm %s1819_s1, 2048 }
  0x24   : > { %s1011_s12 = scalar_lea.hbm %s1437_s5, 1024  ;;  %p1017_p12 = scmp.lt.u32.totalorder %s1437_s5, %s1819_s1 }
  0x25   : > { %p1012_p8 = scmp.ne.s32.totalorder %s1437_s5, %s1011_s12  ;;  %p1018_p13 = scmp.lt.u32.totalorder %s1016_s15, %s1011_s12 }
  0x26   : > { %p1020_p4 = scmp.lt.u32.totalorder %s1011_s12, %s1437_s5 }
  0x27   : > { %p1014_p10 = pnand %p1013_p9, %p1012_p8  ;;  %p1019_p2 = por %p1018_p13, %p1017_p12 }
  0x29   : > { %p1015_p11 = pneg %p1014_p10  ;;  %p1021_p6 = por %p1020_p4, %p1019_p2 }
  0x2b   : > { %p1022_p5 = pnand %p1021_p6, %p1015_p11 }
  0x2d   : > { %1025 = shalt.err (!%p1022_p5)
}
  0x2e   : > { %s1026_s11 = scalar_lea.vmem %s1445_s28, 1024  ;;  %s1289_s7 = smov [#allocation7]  }
  0x2f   : > { %p1027_p8 = scmp.ne.s32.totalorder %s1445_s28, %s1026_s11  ;;  %s1031_s14 = sshll.u32 %s1289_s7, 4  ;;  %s1032_s14 = int_to_ptr.vmem [resolvable:$false] %s1031_s14 }
  0x30   : > { %s1033_s16 = scalar_lea.vmem %s1032_s14, 2048  ;;  %p1034_p3 = scmp.lt.s32.totalorder %s1445_s28, %s1032_s14 }
  0x31   : > { %p1029_p10 = pnand %p1027_p8, %p1013_p9  ;;  %p1035_p12 = scmp.lt.s32.totalorder %s1033_s16, %s1026_s11 }
  0x33   : > { %p1030_p0 = pneg %p1029_p10  ;;  %p1036_p13 = por %p1035_p12, %p1034_p3 }
  0x35   : > { %p1037_p2 = pnand %p1036_p13, %p1030_p0 }
  0x37   : > { %1040 = shalt.err (!%p1037_p2)
}
  0x38   : > { %s1290_s12 = smov 64   ;;  %s1291_s15 = smov 4  }
  0x39   : > { %848 = dma.hbm_to_vmem [thread:$0]  (!%p1441_p7), %s1437_s5, 1024, %s1445_s28, %s1447_s9, %s1290_s12, %s1290_s12, %s1291_s15  }
  0x3a   : > { %s1476_s17 = sadd.s32 4294967295, %s1287_s6   ;;  %p748_p0 = scmp.ge.s32.totalorder %s1287_s6, 1 }
  0x3b   : > { %p1798_p3 = scmp.eq.s32.totalorder %s1476_s17, 0  ;;  %p190_p5 = scmp.lt.s32.totalorder %s1287_s6, 5 }
  0x3c   : > { %p1821_p9 = scmp.ne.s32.totalorder %s1251_s22, %s1247_s21  ;;  %s1292_s2 = smov [#allocation10]  }
  0x3d   : > { %p1490_p4 = pnand %p748_p0, %p190_p5  ;;  %s205_s5 = sshll.u32 %s1292_s2, 4  ;;  %s206_s5 = int_to_ptr.vmem [resolvable:$true] %s205_s5 }
  0x3e   : > { %p1486_p11 = por %p1821_p9, %p1798_p3  ;;  %s1826_s4 = sld [smem:[#allocation27_spill]] }
  0x3f   : > { %s1824_s7 = scalar_select %p1490_p4, 1, 0 }
  0x40   : > { %s1822_s11 = scalar_select %p1486_p11, 1, 0 }
  0x41   : > { %p838_p7 = pneg %p1490_p4 }
  0x42   : > { %1823 = sst [smem:[#allocation23_spill]] %s1822_s11 }
  0x43   : > { %p1498_p6 = pnand %p838_p7, %p1798_p3 }
  0x44   : > { %s1041_s16 = scalar_lea.hbm %s1826_s4, 256 }
  0x45   : > { %p1042_p8 = scmp.ne.s32.totalorder %s1826_s4, %s1041_s16  ;;  %p1043_p10 = pneg %p1498_p6 }
  0x46   : > { %p1048_p2 = scmp.lt.u32.totalorder %s1041_s16, %s1826_s4 }
  0x47   : > { %p1044_p12 = pnand %p1043_p10, %p1042_p8 }
  0x49   : > { %p1045_p13 = pneg %p1044_p12 }
  0x4b   : > { %p1050_p0 = pnand %p1048_p2, %p1045_p13 }
  0x4d   : > { %1053 = shalt.err (!%p1050_p0)
}
  0x4e   : > { %s1054_s13 = scalar_lea.vmem %s206_s5, 256  ;;  %p1062_p3 = scmp.lt.s32.totalorder %s206_s5, %s206_s5 }
  0x4f   : > { %p1055_p5 = scmp.ne.s32.totalorder %s206_s5, %s1054_s13  ;;  %p1063_p11 = scmp.lt.s32.totalorder %s1054_s13, %s1054_s13 }
  0x51   : > { %p1057_p9 = pnand %p1055_p5, %p1043_p10  ;;  %p1064_p4 = por %p1063_p11, %p1062_p3 }
  0x53   : > { %p1058_p7 = pneg %p1057_p9 }
  0x55   : > { %p1065_p1 = pnand %p1064_p4, %p1058_p7 }
  0x57   : > { %1068 = shalt.err (!%p1065_p1)
}
  0x58   : > { %s1293_s21 = smov 128   ;;  %s1294_s1 = smov 8  }
  0x59   : > { %841 = dma.hbm_to_vmem [thread:$0]  (!%p1498_p6), %s1826_s4, 256, %s206_s5, [#allocation11], %s1293_s21, %s1293_s21, %s1294_s1  }
  0x5a   : > { %s37_s16 = sadd.s32 1, %s1283_s30  ;;  %p1827_p1 = scmp.ne.s32.totalorder %s1816_s8, 0 }
  0x5b   : > { %s46_s12 = sadd.s32 1, %s1267_s26  ;;  %p53_p3 = scmp.ne.s32.totalorder %s1267_s26, %s1263_s25 }
  0x5c   : > { %s1878_s16 = smov (!%p1827_p1, %s37_s16), %s1283_s30  ;;  %p59_p4 = scmp.ne.s32.totalorder %s1263_s25, %s1259_s24 }
  0x5d   : > { %p39_p11 = scmp.ge.s32.totalorder %s1878_s16, 2  ;;  %p1828_p8 = scmp.eq.s32.totalorder %s1287_s6, 0 }
  0x5e   : > { %s219_s28 = sand.u32 1, %s1267_s26   ;;  %p1831_p6 = scmp.eq.s32.totalorder %s1476_s17, 0 }
  0x5f   : > { %p1529_p10 = por %p1828_p8, %p53_p3  ;;  %s1880_s16 = smov (%p39_p11, %s1878_s16), 0 }
  0x60   : > { %1830 = sst [smem:[#allocation24_spill]] %s1880_s16  ;;  %p1538_p12 = por %p1831_p6, %p59_p4 }
  0x61   : > { %s1544_s5 = ssub.s32 %s1283_s30, %s1880_s16  ;;  %s751_s24 = sshll.u32 %s219_s28, 3 }
  0x62   : > { %s1832_s8 = scalar_select %p1538_p12, 1, 0 }
  0x63   : > { %s43_s2 = sor.u32 %s1424_s10, %s1544_s5  ;;  %s752_s21 = sshll.u32 %s1283_s30, 1 }
  0x64   : > { %p44_p2 = scmp.eq.s32.totalorder %s43_s2, 0  ;;  %s223_s1 = scalar_lea.vmem [#allocation4], %s751_s24 }
  0x65   : > { %s232_s13 = sshll.u32 %s223_s1, 4  ;;  %s228_s4 = sadd.s32 %s1279_s29, %s752_s21  ;;  %s1554_s13 = int_to_ptr.vmem [resolvable:$true] %s232_s13 }
  0x66   : > { %s1551_s14 = scalar_select %p44_p2, %s1267_s26, %s46_s12  }
  0x67   : > { %s753_s23 = sshll.u32 %s228_s4, 7  ;;  %p1833_p0 = scmp.lt.s32.totalorder %s1287_s6, 4 }
  0x68   : > { %s1567_s10 = scalar_lea.hbm %s1788_s0, %s753_s23  ;;  %s220_s12 = scalar_lea.sflag [#allocation5], %s219_s28 }
  0x69   : > { %p1560_p5 = pnand %p1833_p0, %p1529_p10  ;;  %s1069_s24 = scalar_lea.hbm %s1567_s10, 128 }
  0x6a   : > { %p1070_p9 = scmp.ne.s32.totalorder %s1567_s10, %s1069_s24  ;;  %s1074_s27 = scalar_lea.hbm %s1788_s0, 512 }
  0x6b   : > { %p1071_p7 = pneg %p1560_p5  ;;  %p1075_p11 = scmp.lt.u32.totalorder %s1567_s10, %s1788_s0 }
  0x6c   : > { %p1076_p4 = scmp.lt.u32.totalorder %s1074_s27, %s1069_s24  ;;  %p1078_p10 = scmp.lt.u32.totalorder %s1069_s24, %s1567_s10 }
  0x6d   : > { %p1072_p1 = pnand %p1071_p7, %p1070_p9 }
  0x6e   : > { %p1077_p8 = por %p1076_p4, %p1075_p11 }
  0x6f   : > { %p1073_p3 = pneg %p1072_p1 }
  0x70   : > { %p1079_p6 = por %p1078_p10, %p1077_p8 }
  0x72   : > { %p1080_p2 = pnand %p1079_p6, %p1073_p3 }
  0x74   : > { %1083 = shalt.err (!%p1080_p2)
}
  0x75   : > { %s1084_s28 = scalar_lea.vmem %s1554_s13, 128  ;;  %s1295_s2 = smov [#allocation4]  }
  0x76   : > { %p1085_p0 = scmp.ne.s32.totalorder %s1554_s13, %s1084_s28  ;;  %s1089_s21 = sshll.u32 %s1295_s2, 4  ;;  %s1090_s21 = int_to_ptr.vmem [resolvable:$false] %s1089_s21 }
  0x77   : > { %s1091_s1 = scalar_lea.vmem %s1090_s21, 256  ;;  %p1092_p13 = scmp.lt.s32.totalorder %s1554_s13, %s1090_s21 }
  0x78   : > { %p1087_p9 = pnand %p1085_p0, %p1071_p7  ;;  %p1093_p11 = scmp.lt.s32.totalorder %s1091_s1, %s1084_s28 }
  0x7a   : > { %p1088_p1 = pneg %p1087_p9  ;;  %p1094_p4 = por %p1093_p11, %p1092_p13 }
  0x7c   : > { %p1095_p8 = pnand %p1094_p4, %p1088_p1 }
  0x7e   : > { %1098 = shalt.err (!%p1095_p8)
}
  0x7f   : > { %845 = dma.hbm_to_vmem [thread:$0]  (!%p1560_p5), %s1567_s10, 128, %s1554_s13, %s220_s12  }
  0x80   : > { %s747_s24 = sadd.s32 4294967294, %s1287_s6   ;;  %s119_s4 = sadd.s32 1, %s1243_s20 }
  0x81   : > { %p1835_p13 = scmp.eq.s32.totalorder %s1544_s5, 0  ;;  %p126_p7 = scmp.ne.s32.totalorder %s1243_s20, %s1239_s19 }
  0x82   : > { %p132_p3 = scmp.ne.s32.totalorder %s1239_s19, %s1235_s18  ;;  %p177_p10 = scmp.eq.s32.totalorder %s1476_s17, 3 }
  0x83   : > { %s1599_s16 = scalar_select %p1835_p13, %s1243_s20, %s119_s4  }
  0x84   : > { %p183_p6 = scmp.eq.s32.totalorder %s747_s24, 3  ;;  %p1836_p2 = scmp.eq.s32.totalorder %s1287_s6, 0 }
  0x85   : > { %p1837_p9 = scmp.eq.s32.totalorder %s1476_s17, 0  ;;  %p1614_p11 = por %p177_p10, %p126_p7 }
  0x86   : > { %p128_p0 = por %p126_p7, %p1836_p2  ;;  %p1618_p5 = por %p183_p6, %p132_p3 }
  0x87   : > { %p1610_p1 = por %p132_p3, %p1837_p9  ;;  %s262_s5 = sand.u32 1, %s1243_s20  }
  0x88   : > { %s1839_s27 = scalar_select %p1614_p11, 1, 0 }
  0x89   : > { %s1838_s15 = scalar_select %p1610_p1, 1, 0 }
  0x8a   : > { %s1840_s13 = scalar_select %p1618_p5, 1, 0 }
  0x8b   : > { %s758_s10 = sshll.u32 %s1283_s30, 7  ;;  %s757_s12 = sshll.u32 %s262_s5, 3 }
  0x8c   : > { %s1627_s28 = scalar_lea.hbm %s1791_s3, %s758_s10  ;;  %p1841_p4 = scmp.lt.s32.totalorder %s1287_s6, 4 }
  0x8d   : > { %s264_s21 = scalar_lea.vmem [#allocation9], %s757_s12  ;;  %s1099_s24 = scalar_lea.hbm %s1627_s28, 128 }
  0x8e   : > { %p1631_p8 = pnand %p1841_p4, %p128_p0  ;;  %s271_s1 = sshll.u32 %s264_s21, 4  ;;  %s272_s1 = int_to_ptr.vmem [resolvable:$true] %s271_s1 }
  0x8f   : > { %p1100_p13 = scmp.ne.s32.totalorder %s1627_s28, %s1099_s24  ;;  %s1104_s10 = scalar_lea.hbm %s1791_s3, 256 }
  0x90   : > { %p1101_p7 = pneg %p1631_p8  ;;  %p1105_p6 = scmp.lt.u32.totalorder %s1627_s28, %s1791_s3 }
  0x91   : > { %p1106_p2 = scmp.lt.u32.totalorder %s1104_s10, %s1099_s24  ;;  %p1108_p9 = scmp.lt.u32.totalorder %s1099_s24, %s1627_s28 }
  0x92   : > { %p1102_p3 = pnand %p1101_p7, %p1100_p13 }
  0x93   : > { %p1107_p0 = por %p1106_p2, %p1105_p6 }
  0x94   : > { %p1103_p10 = pneg %p1102_p3 }
  0x95   : > { %p1109_p4 = por %p1108_p9, %p1107_p0 }
  0x97   : > { %p1110_p5 = pnand %p1109_p4, %p1103_p10 }
  0x99   : > { %1113 = shalt.err (!%p1110_p5)
}
  0x9a   : > { %s1114_s12 = scalar_lea.vmem %s272_s1, 128  ;;  %s1296_s21 = smov [#allocation9]  }
  0x9b   : > { %p1115_p11 = scmp.ne.s32.totalorder %s272_s1, %s1114_s12  ;;  %s1119_s4 = sshll.u32 %s1296_s21, 4  ;;  %s1120_s4 = int_to_ptr.vmem [resolvable:$false] %s1119_s4 }
  0x9c   : > { %s1121_s5 = scalar_lea.vmem %s1120_s4, 256  ;;  %p1122_p1 = scmp.lt.s32.totalorder %s272_s1, %s1120_s4 }
  0x9d   : > { %p1117_p13 = pnand %p1115_p11, %p1101_p7  ;;  %p1123_p12 = scmp.lt.s32.totalorder %s1121_s5, %s1114_s12 }
  0x9f   : > { %p1118_p3 = pneg %p1117_p13  ;;  %p1124_p2 = por %p1123_p12, %p1122_p1 }
  0xa1   : > { %p1125_p6 = pnand %p1124_p2, %p1118_p3 }
  0xa3   : > { %1128 = shalt.err (!%p1125_p6)
}
  0xa4   : > { %851 = dma.hbm_to_vmem [thread:$0]  (!%p1631_p8), %s1627_s28, 128, %s272_s1, %s1447_s9  }
  0xa5   : > { %p1843_p5 = scmp.ne.s32.totalorder %s1824_s7, 0 }
  0xa6   : > { %s282_s24 = sand.u32 (!%p1843_p5), 1, %s1263_s25   ;;  %p1844_p11 = scmp.ne.s32.totalorder (!%p1843_p5), %s1832_s8, 0 }
  0xa7   : > { %280 = sbr.rel (%p1843_p5) target bundleno = 723 (0x2d3), region = 40  ;;  %s1660_s10 = sshll.u32 (!%p1843_p5), %s282_s24, 3 }
  0xa8   : > { %s283_s11 = scalar_lea.sflag (!%p1843_p5), [#allocation5], %s282_s24  ;;  %s286_s23 = scalar_lea.vmem (!%p1843_p5), [#allocation4], %s1660_s10 }
  0xae   : > { %1214 = dma.done.wait (%p1844_p11), %s283_s11, 128  }
  0xaf   : > { %1216 = vsyncadd (%p1844_p11), %s283_s11, 4294967168  ;;  %s1845_s2 = sld [smem:[#allocation23_spill]]  ;;  %s291_s9 = sand.u32 1, %s1476_s17  }
  0xb0   : > { %s293_s28 = sand.u32 1, %s1251_s22   ;;  %s292_s1 = scalar_lea.sflag [#allocation8], %s291_s9 }
  0xb1   : > { %s761_s7 = sshll.u32 %s293_s28, 6 }
  0xb2   : > { %s1669_s12 = scalar_lea.vmem [#allocation7], %s761_s7 }
  0xb5   : > { %p1846_p12 = scmp.ne.s32.totalorder %s1845_s2, 0 }
  0xb7   : > { %1218 = dma.done.wait (%p1846_p12), %s292_s1, 1024  }
  0xb8   : > { %1220 = vsyncadd (%p1846_p12), %s292_s1, 4294966272  ;;  %s302_s21 = sand.u32 1, %s1239_s19   ;;  %p1847_p1 = scmp.ne.s32.totalorder %s1838_s15, 0 }
  0xb9   : > { %s1678_s8 = sshll.u32 %s302_s21, 3 }
  0xba   : > { %s304_s4 = scalar_lea.vmem [#allocation9], %s1678_s8 }
  0xbb   : > { %1222 = dma.done.wait (%p1847_p1), %s292_s1, 128  }
  0xbc   : > { %1224 = vsyncadd (%p1847_p1), %s292_s1, 4294967168  ;;  %p1848_p8 = scmp.eq.s32.totalorder %s1476_s17, 0 }
  0xbe   : > { %1226 = dma.done.wait (%p1848_p8), [#allocation11], 256   ;;  %p1849_p7 = pmov %p1848_p8 }
  0xbf   : > { %s344_s5 = scalar_lea.vmem [#allocation12], %s1678_s8  ;;  %s1850_s24 = sld [smem:[#allocation19_spill]] }
  0xc0   : > { %1228 = vsyncadd (%p1849_p7), [#allocation11], 4294967040 }
  0xc5   : > { %p765_p10 = scmp.ne.s32.totalorder %s1850_s24, 0 }
  0xc6   : > { %vm352_vm0 = vcmask (!%p765_p10), 7168   ;;  %v1297_v0 = vmov (!%p765_p10), 0.0  }
  0xc7   : > { %350 = sbr.rel (%p765_p10) target bundleno = 206 (0xce), region = 60  ;;  %351 = vst [vmem:[#allocation2] sm:$0xff] (!%p765_p10), %v1297_v0  ;;  %353 = vst.msk [vmem:[#allocation3] sm:$0xff] (!%p765_p10), %vm352_vm0, %v1297_v0 }
  0xce PF: > { %v984_v1 = vld [vmem:[%s1669_s12] sm:$0xff]   ;;  %v1298_v2 = vmov 0.0   ;;  %v985_v3 = vld [vmem:[%s1669_s12 + $0x8] sm:$0xff]   ;;  %vm1299_vm1 = vmmov 0   ;;  %v986_v4 = vld [vmem:[%s1669_s12 + $0x10] sm:$0xff]   ;;  %vm474_vm2 = vcmask 7168  }
  0xcf   : > { %796 = vmatprep.subr.bf16.mxu0 %v1298_v2  ;;  %812 = vmatprep.mubr.msk.bf16.mxu0 %vm1299_vm1, %v1298_v2  ;;  %v354_v5 = vld [vmem:[%s286_s23] sm:$0xff]  ;;  %v988_v8 = vld [vmem:[%s1669_s12 + $0x20] sm:$0xff]   ;;  %v989_v9 = vld [vmem:[%s1669_s12 + $0x28] sm:$0xff]   ;;  %s1851_s17 = sld [smem:[#allocation19_spill]] }
  0xd0   : > { %797 = vmatpush3.bf16.msra.mxu0 %v984_v1  ;;  %v766_v6 = vmul.f32 -1.442695, %v354_v5  ;;  %v987_v7 = vld [vmem:[%s1669_s12 + $0x18] sm:$0xff]   ;;  %v990_v11 = vld [vmem:[%s1669_s12 + $0x30] sm:$0xff]   ;;  %v469_v17 = vld [vmem:[#allocation3] sm:$0xff] }
  0xd1   : > { %798 = vmatprep.subr.bf16.mxu0 %v1298_v2  ;;  %v991_v13 = vld [vmem:[%s1669_s12 + $0x38] sm:$0xff]   ;;  %v361_v20 = vld [vmem:[#allocation2] sm:$0xff] }
  0xd2   : > { %992 = vpow2.f32 %v766_v6 }
  0xd4   : > { %799 = vmatpush3.bf16.msra.mxu0 %v985_v3 }
  0xd5   : > { %800 = vmatprep.subr.bf16.mxu0 %v1298_v2  ;;  %p775_p0 = scmp.ne.s32.totalorder %s1851_s17, 1 }
  0xd6   : > { %v506_v26 = vld [vmem:[#allocation10] sm:$0xff] (!%p775_p0)  ;;  %v507_v27 = vld [vmem:[#allocation10 + $0x8] sm:$0xff] (!%p775_p0)  ;;  %v499_v28 = vld [vmem:[%s304_s4] sm:$0xff] (!%p775_p0)  ;;  %v1300_v29 = vmov (!%p775_p0), 0.0|0.0   ;;  %vm1301_vm3 = vmmov (!%p775_p0), 0   ;;  %v1302_v31 = vmov (!%p775_p0), 0.0  }
  0xd7   : > { %v824_v30 = vpack.c.bf16 (!%p775_p0), %v507_v27, %v506_v26  ;;  %v777_v32 = vmul.f32 (!%p775_p0), -1.442695, %v499_v28  ;;  %v1303_v34 = vmov (!%p775_p0), 0   ;;  %vm508_vm4 = vcmask (!%p775_p0), 130048   ;;  %s1852_s11 = sld [smem:[#allocation26_spill]] (!%p775_p0) }
  0xd8   : > { %801 = vmatpush3.bf16.msra.mxu0 %v986_v4  ;;  %996 = vset.pattern.permute.xlu0 (!%p775_p0), %v1303_v34 }
  0xd9   : > { %802 = vmatprep.subr.bf16.mxu0 %v1298_v2 }
  0xdc   : > { %803 = vmatpush3.bf16.msra.mxu0 %v987_v7  ;;  %v993_v10 = vpop.eup %992 }
  0xdd   : > { %804 = vmatprep.subr.bf16.mxu0 %v1298_v2  ;;  %v358_v12 = vadd.f32 1.0, %v993_v10  ;;  %v776_v38 = vld [vmem:[%s1852_s11] ss:$0 sm:$0xff] (!%p775_p0) }
  0xdf   : > { %994 = vrcp.f32 %v358_v12 }
  0xe0   : > { %805 = vmatpush3.bf16.msra.mxu0 %v988_v8  ;;  %997 = vpow2.f32 (!%p775_p0), %v777_v32 }
  0xe1   : > { %806 = vmatprep.subr.bf16.mxu0 %v1298_v2 }
  0xe4   : > { %807 = vmatpush3.bf16.msra.mxu0 %v989_v9 }
  0xe5   : > { %808 = vmatprep.subr.bf16.mxu0 %v1298_v2 }
  0xe8   : > { %809 = vmatpush3.bf16.msra.mxu0 %v990_v11 }
  0xe9   : > { %810 = vmatprep.subr.bf16.mxu0 %v1298_v2  ;;  %v995_v14 = vpop.eup %994 }
  0xea   : > { %v362_v15 = vpack.c.bf16 %v995_v14, %v995_v14  ;;  %v470_v16 = vmul.f32 %v995_v14, %v995_v14  ;;  %v998_v35 = vpop.eup (!%p775_p0), %997 }
  0xeb   : > { %v503_v36 = vadd.f32 (!%p775_p0), 1.0, %v998_v35 }
  0xec   : > { %811 = vmatpush3.bf16.msra.mxu0 %v991_v13  ;;  %471 = vadd.xlane.f32.xlu0 %v470_v16 }
  0xed   : > { %823 = vmatprep.subr.bf16.mxu0 (!%p775_p0), %v1300_v29  ;;  %999 = vrcp.f32 (!%p775_p0), %v503_v36 }
  0xef   : > { %813 = vmatmul.mubr.bf16.vlgmr.msra.gmra.mrb[0].mxu0 %v362_v15 }
  0xf0   : > { %820 = vmatprep.mubr.msk.f32.mxu0 (!%p775_p0), %vm1301_vm3, %v1302_v31  ;;  %825 = vmatpush3.bf16.msra.mxu0 (!%p775_p0), %v824_v30 }
  0xf7   : > { %v1000_v37 = vpop.eup (!%p775_p0), %999 }
 0x179   : > { %v472_v18 = vpop.xlane.xlu0 %471 }
 0x17a   : > { %v473_v19 = vadd.f32 %v472_v18, %v469_v17 }
 0x17c   : > { %475 = vst.msk [vmem:[#allocation3] sm:$0xff] %vm474_vm2, %v473_v19 }
 0x183   : > { %v482_v33 = vld [vmem:[#allocation3] sm:$0xff] (!%p775_p0) }
 0x184   : > { %486 = vperm.xlu0 (!%p775_p0), %996, %v482_v33  }
 0x1bf   : > { %479 = sbr.rel (%p775_p0) target bundleno = 696 (0x2b8), region = 64 }
 0x1c2   : > { %v461_v21 = vpop.f32.mrb[0].mxu0 }
 0x1c3   : > { %v467_v22 = vadd.f32 %v461_v21, %v361_v20  ;;  %v814_v23 = vpop.f32.mrb[1].mxu0  ;;  %821 = vmatmul.mubr.msk.f32.vlgmr.msra.gmra.mrb[0].mxu0 (!%p775_p0), %vm508_vm4, %v1000_v37 }
 0x1c4   : > { %v464_v24 = vpop.f32.mrb[2].mxu0 }
 0x1c5   : > { %468 = vst [vmem:[#allocation2] sm:$0xff] %v467_v22  ;;  %v815_v25 = vpop.f32.mrb[3].mxu0 }
 0x1cc   : > { %v480_v42 = vld [vmem:[#allocation2] sm:$0xff] }
 0x1cd   : > { %v481_v43 = vmul.f32 2.0, %v480_v42 }
 0x203   : > { %v487_v39 = vpop.permute.xlu0 %486 }
 0x204   : > { %v495_v40 = vadd.f32 %v776_v38, %v487_v39 }
 0x206   : > { %v496_v41 = vadd.f32 0.0001, %v495_v40 }
 0x208   : > { %1001 = vrcp.f32 %v496_v41 }
 0x212   : > { %v1002_v44 = vpop.eup %1001 }
 0x213   : > { %v498_v45 = vmul.f32 %v1002_v44, %v481_v43 }
 0x215   : > { %v582_v46 = vmax.f32 %v498_v45, 1e-20 }
 0x217   : > { %1003 = vlog2.f32 %v582_v46 }
 0x221   : > { %v1004_v50 = vpop.eup %1003 }
 0x222   : > { %v584_v51 = vmul.f32 0.6931472, %v1004_v50 }
 0x224   : > { %v585_v52 = vmul.f32 0.8, %v584_v51 }
 0x226   : > { %v586_v54 = vmul.f32 1.442695, %v585_v52 }
 0x296   : > { %v578_v47 = vpop.f32.mrb[0].mxu0 }
 0x297   : > { %v588_v48 = vmax.f32 %v578_v47, 1e-20  ;;  %v822_v49 = vpop.f32.mrb[1].mxu0 }
 0x299   : > { %1005 = vlog2.f32 %v588_v48 }
 0x29a   : > { %1007 = vpow2.f32 %v586_v54 }
 0x2a3   : > { %v1006_v53 = vpop.eup %1005 }
 0x2a4   : > { %v590_v55 = vmul.f32 0.6931472, %v1006_v53  ;;  %v1008_v58 = vpop.eup %1007 }
 0x2a6   : > { %v591_v56 = vmul.f32 0.2, %v590_v55 }
 0x2a8   : > { %v592_v57 = vmul.f32 1.442695, %v591_v56 }
 0x2aa   : > { %1009 = vpow2.f32 %v592_v57 }
 0x2b4   : > { %v1010_v59 = vpop.eup %1009 }
 0x2b5   : > { %v594_v60 = vmul.f32 %v1010_v59, %v1008_v58 }
 0x2b7   : > { %595 = vst [vmem:[%s344_s5] sm:$0xff] %v594_v60 }
 0x2b8 PF: > { %s1853_s23 = sld [smem:[#allocation20_spill]]  ;;  %s1854_s7 = sld [smem:[#allocation28_spill]] }
 0x2b9   : > { %s610_s12 = sshll.u32 %s344_s5, 4  ;;  %s597_s4 = scalar_lea.sflag [#allocation6], %s302_s21  ;;  %s611_s12 = int_to_ptr.vmem [resolvable:$true] %s610_s12 }
 0x2ba   : > { %s1129_s24 = scalar_lea.vmem %s611_s12, 128  ;;  %p1855_p4 = scmp.ne.s32.totalorder %s1839_s27, 0 }
 0x2bb   : > { %p1130_p9 = scmp.ne.s32.totalorder %s611_s12, %s1129_s24  ;;  %s1304_s17 = smov [#allocation12]  }
 0x2bc   : > { %s1133_s15 = sshll.u32 %s1304_s17, 4  ;;  %s1134_s15 = int_to_ptr.vmem [resolvable:$false] %s1133_s15 }
 0x2bd   : > { %p1131_p13 = pnand %p1130_p9, %p1855_p4  ;;  %s1135_s10 = scalar_lea.vmem %s1134_s15, 256 }
 0x2be   : > { %s780_s2 = sshll.u32 %s1853_s23, 7  ;;  %p1136_p2 = scmp.lt.s32.totalorder %s611_s12, %s1134_s15 }
 0x2bf   : > { %s1713_s1 = scalar_lea.hbm %s1854_s7, %s780_s2  ;;  %p1132_p3 = pneg %p1131_p13 }
 0x2c0   : > { %p1137_p6 = scmp.lt.s32.totalorder %s1135_s10, %s1129_s24 }
 0x2c2   : > { %p1138_p5 = por %p1137_p6, %p1136_p2 }
 0x2c4   : > { %p1139_p11 = pnand %p1138_p5, %p1132_p3 }
 0x2c6   : > { %1142 = shalt.err (!%p1139_p11)
}
 0x2c7   : > { %s1143_s21 = scalar_lea.hbm %s1713_s1, 128  ;;  %s1147_s11 = scalar_lea.hbm %s1854_s7, 256 }
 0x2c8   : > { %p1144_p12 = scmp.ne.s32.totalorder %s1713_s1, %s1143_s21  ;;  %p1148_p7 = scmp.lt.u32.totalorder %s1713_s1, %s1854_s7 }
 0x2c9   : > { %p1149_p10 = scmp.lt.u32.totalorder %s1147_s11, %s1143_s21  ;;  %p1151_p9 = scmp.lt.u32.totalorder %s1143_s21, %s1713_s1 }
 0x2ca   : > { %p1145_p1 = pnand %p1144_p12, %p1855_p4 }
 0x2cb   : > { %p1150_p0 = por %p1149_p10, %p1148_p7 }
 0x2cc   : > { %p1146_p8 = pneg %p1145_p1 }
 0x2cd   : > { %p1152_p13 = por %p1151_p9, %p1150_p0 }
 0x2cf   : > { %p1153_p3 = pnand %p1152_p13, %p1146_p8 }
 0x2d1   : > { %1156 = shalt.err (!%p1153_p3)
}
 0x2d2   : > { %836 = dma.vmem_to_hbm [thread:$0]  (%p1855_p4), %s611_s12, 128, %s1713_s1, %s597_s4  }
 0x2d3 PF: > { %p859_p2 = scmp.ge.s32.totalorder %s1287_s6, 2  ;;  %s622_s9 = sand.u32 1, %s1235_s18  }
 0x2d4   : > { %p1856_p6 = scmp.ne.s32.totalorder %s1840_s13, 0  ;;  %s623_s28 = scalar_lea.sflag [#allocation6], %s622_s9 }
 0x2d6   : > { %p853_p5 = pnand %p859_p2, %p1856_p6 }
 0x2d8   : > { %1230 = dma.done.wait (!%p853_p5), %s623_s28, 128  }
 0x2d9   : > { %1232 = vsyncadd (!%p853_p5), %s623_s28, 4294967168  ;;  %s25_s6 = sadd.s32 1, %s1287_s6   ;;  %s1858_s27 = sld [smem:[#allocation18_spill]] }
 0x2da   : > { %p1741_p11 = scmp.ge.s32.totalorder %s25_s6, 6   ;;  %s1859_s23 = sld [smem:[#allocation22_spill]] }
 0x2db   : > { %s1860_s13 = sld [smem:[#allocation21_spill]]  ;;  %s1861_s1 = sld [smem:[#allocation24_spill]] }
 0x2dc   : > { %s1863_s18 = smov %s1239_s19  ;;  %s1864_s19 = smov %s1243_s20 }
 0x2dd   : > { %s1865_s20 = smov %s1599_s16  ;;  %s1866_s21 = smov %s1251_s22 }
 0x2de   : > { %s1868_s24 = smov %s1263_s25  ;;  %s1869_s25 = smov %s1267_s26 }
 0x2df   : > { %s1867_s22 = smov %s1858_s27  ;;  %s1870_s26 = smov %s1551_s14 }
 0x2e0   : > { %s1871_s27 = smov %s1279_s29  ;;  %s1872_s28 = smov %s1283_s30 }
 0x2e1   : > { %s1873_s29 = smov %s1860_s13  ;;  %s1874_s30 = smov %s1861_s1 }
 0x2e2   :  { %24 = sbr.rel (!%p1741_p11) target bundleno = 18 (0x12), region = 121 }
 0x2e9   :  { %628 = vsyncpa [#allocation5], 1 }
 0x2ea   :  { %630 = vsyncpa [#allocation5 + $0x1], 1 }
 0x2eb   :  { %631 = vsyncpa [#allocation8], 1 }
 0x2ec   :  { %633 = vsyncpa [#allocation8 + $0x1], 1 }
 0x2ed   :  { %634 = vsyncpa [#allocation11], 1 }
 0x2ee   :  { %635 = vsyncpa [#allocation6], 1 }
 0x2ef   :  { %637 = vsyncpa [#allocation6 + $0x1], 1 }

</bundles_post_ra>
